<compile_context>
chip_gen: v5e
topology: v5e:2x2
jax: 0.10.0
libtpu: 0.0.40
codegen_flags: <defaults>
</compile_context>

<pallas_src>
import functools

import jax
import jax.numpy as jnp
from jax import lax
from jax.experimental import pallas as pl
from jax.experimental.pallas import tpu as pltpu


# ---------------------------------------------------------------------------
# Fused Pallas kernel: conv1+BN+LeakyReLU -> conv2+BN+LeakyReLU
# ---------------------------------------------------------------------------
def _fused_unet_block_kernel(x_ref, w1_ref, s1_ref, b1_ref,
                             w2_ref, s2_ref, b2_ref, o_ref,
                             *, H, neg_slope):
    Bblk = x_ref.shape[0]

    def conv_bn_lrelu(x, w_ref, s_ref, b_ref):
        # x: (Bblk, H, WCin) f32.  Build the three KH-tap H-shifted copies
        # (zero rows = H halo), lane-concat them, and do a single MXU matmul
        # against the row-stacked banded weight (K = KH*W*Cin).  The KW taps
        # and the W-border zero padding are folded into the band matrix.
        wc_in = x.shape[2]
        wc_out = w_ref.shape[1]
        zrow = jnp.zeros((Bblk, 1, wc_in), jnp.float32)
        x_up = jnp.concatenate([zrow, x[:, :H - 1, :]], axis=1)   # row h reads h-1
        x_dn = jnp.concatenate([x[:, 1:, :], zrow], axis=1)       # row h reads h+1
        xs = jnp.concatenate([x_up, x, x_dn], axis=-1)            # (Bblk, H, 3*wc_in)
        xs = xs.reshape(Bblk * H, 3 * wc_in)
        y = jnp.dot(xs.astype(jnp.bfloat16), w_ref[...],
                    preferred_element_type=jnp.float32)
        y = y * s_ref[...] + b_ref[...]
        y = jnp.maximum(y, neg_slope * y)                         # LeakyReLU (slope < 1)
        return y.reshape(Bblk, H, wc_out)

    y1 = conv_bn_lrelu(x_ref[...], w1_ref, s1_ref, b1_ref)
    y2 = conv_bn_lrelu(y1, w2_ref, s2_ref, b2_ref)
    # Lane-dense (W*Cout is a multiple of 128 here) unmasked store.
    o_ref[...] = y2


# ---------------------------------------------------------------------------
# Weight preprocessing: fold the KW taps + W-border zero padding into a
# row-stacked banded matrix (KH*W*Cin, W*Cout) so each conv is ONE matmul.
# ---------------------------------------------------------------------------
def _make_banded_weights(w_hwio, W):
    KH, KW, Cin, Cout = w_hwio.shape
    wi = jnp.arange(W)[:, None]
    wo = jnp.arange(W)[None, :]
    kw = wi - wo + (KW // 2)                     # tap index for (wi, wo)
    valid = (kw >= 0) & (kw <= KW - 1)
    band = w_hwio[:, jnp.clip(kw, 0, KW - 1)]    # (KH, W, W, Cin, Cout)
    band = band * valid[None, :, :, None, None]
    # -> [kh, wi*Cin + ci, wo*Cout + co], then stack the KH taps along rows.
    band = band.transpose(0, 1, 3, 2, 4).reshape(KH, W * Cin, W * Cout)
    return band.reshape(KH * W * Cin, W * Cout)


def fold_block_params(params, W):
    """One-time parameter fold (hoisted out of the per-call forward)."""
    def fold_layer(p):
        cout = p["w_hwio"].shape[-1]
        bigw = _make_banded_weights(p["w_hwio"], W).astype(jnp.bfloat16)
        scale = jnp.tile(p["scale"], W).reshape(1, W * cout)
        shift = jnp.tile(p["shift"], W).reshape(1, W * cout)
        return bigw, scale, shift
    w1, s1, b1 = fold_layer(params["conv1"])
    w2, s2, b2 = fold_layer(params["conv2"])
    return dict(w1=w1, s1=s1, b1=b1, w2=w2, s2=s2, b2=b2)


# ---------------------------------------------------------------------------
# UNetBlock forward (two fused ConvolutionLayers)
# ---------------------------------------------------------------------------
def unet_block_forward(x_ncdhw, folded, *, neg_slope):
    """x_ncdhw: [N, C, D, H, W] float32 -> [N, Cout, D, H, W] float32."""
    N, C, D, H, W = x_ncdhw.shape
    w1, s1, b1 = folded["w1"], folded["s1"], folded["b1"]
    w2, s2, b2 = folded["w2"], folded["s2"], folded["b2"]
    K1, WCmid = w1.shape
    K2, WCout = w2.shape
    Cout = WCout // W
    B = N * D

    # NCDHW -> lane-dense [N*D, H, W*C] slab.
    # TODO(synk): carrying activations in NDHWC through the surrounding model
    # would remove this transpose and the inverse one below (extra HBM trips).
    x = jnp.transpose(x_ncdhw, (0, 2, 3, 4, 1)).reshape(B, H, W * C)

    kernel = functools.partial(_fused_unet_block_kernel,
                               H=H, neg_slope=neg_slope)

    # FLOPs actually executed by the banded matmuls (K = KH*W*Cin).
    flops = 2 * B * H * (K1 * WCmid + K2 * WCout)
    bytes_accessed = (4 * x.size + 2 * (w1.size + w2.size)
                      + 4 * (s1.size + b1.size + s2.size + b2.size)
                      + 4 * B * H * WCout)

    y = pl.pallas_call(
        kernel,
        out_shape=jax.ShapeDtypeStruct((B, H, WCout), jnp.float32),
        grid=(1,),
        in_specs=[
            pl.BlockSpec((B, H, W * C), lambda i: (0, 0, 0)),
            pl.BlockSpec((K1, WCmid), lambda i: (0, 0)),
            pl.BlockSpec((1, WCmid), lambda i: (0, 0)),
            pl.BlockSpec((1, WCmid), lambda i: (0, 0)),
            pl.BlockSpec((K2, WCout), lambda i: (0, 0)),
            pl.BlockSpec((1, WCout), lambda i: (0, 0)),
            pl.BlockSpec((1, WCout), lambda i: (0, 0)),
        ],
        out_specs=pl.BlockSpec((B, H, WCout), lambda i: (0, 0, 0)),
        compiler_params=pltpu.CompilerParams(
            dimension_semantics=("arbitrary",)),
        cost_estimate=pl.CostEstimate(
            flops=flops, transcendentals=0, bytes_accessed=bytes_accessed),
    )(x, w1, s1, b1, w2, s2, b2)

    # [N*D, H, W*Cout] -> NCDHW
    return jnp.transpose(y.reshape(N, D, H, W, Cout), (0, 4, 1, 2, 3))


# ---------------------------------------------------------------------------
# Parameter construction (deterministic, synthetic)
# ---------------------------------------------------------------------------
def make_layer_params(key, cin, cout, eps=1e-5):
    k = jax.random.split(key, 6)
    w_hwio = jax.random.normal(k[0], (3, 3, cin, cout), jnp.float32) * 0.1
    bias = jax.random.normal(k[1], (cout,), jnp.float32) * 0.1
    gamma = 1.0 + 0.1 * jax.random.normal(k[2], (cout,), jnp.float32)
    beta = 0.1 * jax.random.normal(k[3], (cout,), jnp.float32)
    r_mean = 0.1 * jax.random.normal(k[4], (cout,), jnp.float32)
    r_var = jnp.abs(1.0 + 0.1 * jax.random.normal(k[5], (cout,), jnp.float32))
    # Fold conv bias + eval-mode BatchNorm into per-channel scale/shift.
    # TODO(synk): training-mode BN (batch statistics) would need a cross-grid
    #             reduction; eval-mode (running stats) semantics are used here.
    scale = gamma / jnp.sqrt(r_var + eps)
    shift = beta + (bias - r_mean) * scale
    return dict(w_hwio=w_hwio, bias=bias, gamma=gamma, beta=beta,
                mean=r_mean, var=r_var, scale=scale, shift=shift)


# ---------------------------------------------------------------------------
# Pure-JAX reference (for correctness check of the Pallas path)
# ---------------------------------------------------------------------------
def ref_layer(x_ncdhw, p, eps=1e-5, slope=0.01):
    w = jnp.transpose(p["w_hwio"], (3, 2, 0, 1))[:, :, None, :, :]  # OIDHW
    y = lax.conv_general_dilated(
        x_ncdhw, w, window_strides=(1, 1, 1),
        padding=[(0, 0), (1, 1), (1, 1)],
        dimension_numbers=("NCDHW", "OIDHW", "NCDHW"))
    rs = lambda v: v.reshape(1, -1, 1, 1, 1)
    y = y + rs(p["bias"])
    y = (y - rs(p["mean"])) / jnp.sqrt(rs(p["var"]) + eps) * rs(p["gamma"]) \
        + rs(p["beta"])
    return jnp.where(y > 0, y, slope * y)


def ref_forward(x, params, slope=0.01):
    y = ref_layer(x, params["conv1"], slope=slope)
    y = ref_layer(y, params["conv2"], slope=slope)
    return y


if __name__ == "__main__":
    key = jax.random.PRNGKey(0)
    kx, k1, k2 = jax.random.split(key, 3)

    N, Cin, Cout, D, H, W = 2, 4, 8, 4, 16, 16
    neg_slope = 0.01  # acti_func='leakyrelu', acti_func_param=0.01

    x = jax.random.normal(kx, (N, Cin, D, H, W), jnp.float32)
    params = {
        "conv1": make_layer_params(k1, Cin, Cout),
        "conv2": make_layer_params(k2, Cout, Cout),
    }

    # One-time parameter fold (banded weights in bf16, tiled scale/shift).
    folded = jax.tree_util.tree_map(jax.block_until_ready,
                                    fold_block_params(params, W))

    fwd = jax.jit(functools.partial(unet_block_forward, neg_slope=neg_slope))
    out = jax.block_until_ready(fwd(x, folded))

    ref = jax.block_until_ready(ref_forward(x, params, slope=neg_slope))
    assert out.shape == (N, Cout, D, H, W)
    max_err = float(jnp.max(jnp.abs(out - ref)))
    # bf16 MXU inputs (f32 accumulation) -> loosened tolerance per review.
    assert jnp.allclose(out, ref, rtol=5e-2, atol=5e-2), max_err

    print("KERNEL_OK")
</pallas_src>

<mosaic_0001>
module attributes {stable_mosaic.version = 11 : i64} {
  func.func @_fused_unet_block_kernel(%arg0: i32, %arg1: memref<8x16x64xf32, #tpu.memory_space<vmem>>, %arg2: memref<192x128xbf16, #tpu.memory_space<vmem>>, %arg3: memref<1x128xf32, #tpu.memory_space<vmem>>, %arg4: memref<1x128xf32, #tpu.memory_space<vmem>>, %arg5: memref<384x128xbf16, #tpu.memory_space<vmem>>, %arg6: memref<1x128xf32, #tpu.memory_space<vmem>>, %arg7: memref<1x128xf32, #tpu.memory_space<vmem>>, %arg8: memref<8x16x128xf32, #tpu.memory_space<vmem>>) attributes {dimension_semantics = [#tpu.dimension_semantics<arbitrary>], iteration_bounds = array<i64: 1>, scalar_prefetch = 0 : i64, scratch_operands = 0 : i64, tpu.core_type = #tpu.core_type<tc>, window_params = [{pipeline_mode = #tpu.pipeline_mode<synchronous>, transform_indices = @transform_0, window_bounds = array<i64: 8, 16, 64>}, {pipeline_mode = #tpu.pipeline_mode<synchronous>, transform_indices = @transform_1, window_bounds = array<i64: 192, 128>}, {pipeline_mode = #tpu.pipeline_mode<synchronous>, transform_indices = @transform_2, window_bounds = array<i64: 1, 128>}, {pipeline_mode = #tpu.pipeline_mode<synchronous>, transform_indices = @transform_3, window_bounds = array<i64: 1, 128>}, {pipeline_mode = #tpu.pipeline_mode<synchronous>, transform_indices = @transform_4, window_bounds = array<i64: 384, 128>}, {pipeline_mode = #tpu.pipeline_mode<synchronous>, transform_indices = @transform_5, window_bounds = array<i64: 1, 128>}, {pipeline_mode = #tpu.pipeline_mode<synchronous>, transform_indices = @transform_6, window_bounds = array<i64: 1, 128>}, {pipeline_mode = #tpu.pipeline_mode<synchronous>, transform_indices = @transform_7, window_bounds = array<i64: 8, 16, 128>}]} {
    %c0 = arith.constant 0 : index
    %c0_0 = arith.constant 0 : index
    %c0_1 = arith.constant 0 : index
    %0 = vector.load %arg1[%c0, %c0_0, %c0_1] : memref<8x16x64xf32, #tpu.memory_space<vmem>>, vector<8x16x64xf32>
    %cst = arith.constant 0.000000e+00 : f32
    %1 = vector.broadcast %cst : f32 to vector<8x1x64xf32>
    %2 = vector.extract_strided_slice %0 {offsets = [0, 0, 0], sizes = [8, 15, 64], strides = [1, 1, 1]} : vector<8x16x64xf32> to vector<8x15x64xf32>
    %3 = tpu.concatenate %1, %2 in 1 : vector<8x1x64xf32>, vector<8x15x64xf32> -> vector<8x16x64xf32>
    %4 = vector.extract_strided_slice %0 {offsets = [0, 1, 0], sizes = [8, 15, 64], strides = [1, 1, 1]} : vector<8x16x64xf32> to vector<8x15x64xf32>
    %5 = tpu.concatenate %4, %1 in 1 : vector<8x15x64xf32>, vector<8x1x64xf32> -> vector<8x16x64xf32>
    %6 = tpu.concatenate %3, %0, %5 in 2 : vector<8x16x64xf32>, vector<8x16x64xf32>, vector<8x16x64xf32> -> vector<8x16x192xf32>
    %7 = vector.shape_cast %6 : vector<8x16x192xf32> to vector<128x192xf32>
    %8 = arith.truncf %7 : vector<128x192xf32> to vector<128x192xbf16>
    %c0_2 = arith.constant 0 : index
    %c0_3 = arith.constant 0 : index
    %9 = vector.load %arg2[%c0_2, %c0_3] : memref<192x128xbf16, #tpu.memory_space<vmem>>, vector<192x128xbf16>
    %cst_4 = arith.constant dense<0.000000e+00> : vector<128x128xf32>
    %10 = tpu.matmul %8, %9, %cst_4 {dimension_numbers = #tpu.dot_dimension_numbers<[1], [0], [0], [1], [0, 0, 1, 1], [], []>} : vector<128x192xbf16>, vector<192x128xbf16>, vector<128x128xf32> -> vector<128x128xf32>
    %c0_5 = arith.constant 0 : index
    %c0_6 = arith.constant 0 : index
    %11 = vector.load %arg3[%c0_5, %c0_6] : memref<1x128xf32, #tpu.memory_space<vmem>>, vector<1x128xf32>
    %12 = vector.broadcast %11 : vector<1x128xf32> to vector<128x128xf32>
    %13 = arith.mulf %10, %12 : vector<128x128xf32>
    %c0_7 = arith.constant 0 : index
    %c0_8 = arith.constant 0 : index
    %14 = vector.load %arg4[%c0_7, %c0_8] : memref<1x128xf32, #tpu.memory_space<vmem>>, vector<1x128xf32>
    %15 = vector.broadcast %14 : vector<1x128xf32> to vector<128x128xf32>
    %16 = arith.addf %13, %15 : vector<128x128xf32>
    %cst_9 = arith.constant 0.00999999977 : f32
    %17 = vector.broadcast %cst_9 : f32 to vector<128x128xf32>
    %18 = arith.mulf %17, %16 : vector<128x128xf32>
    %19 = arith.maximumf %16, %18 : vector<128x128xf32>
    %20 = vector.shape_cast %19 : vector<128x128xf32> to vector<8x16x128xf32>
    %cst_10 = arith.constant 0.000000e+00 : f32
    %21 = vector.broadcast %cst_10 : f32 to vector<8x1x128xf32>
    %22 = vector.extract_strided_slice %20 {offsets = [0, 0, 0], sizes = [8, 15, 128], strides = [1, 1, 1]} : vector<8x16x128xf32> to vector<8x15x128xf32>
    %23 = tpu.concatenate %21, %22 in 1 : vector<8x1x128xf32>, vector<8x15x128xf32> -> vector<8x16x128xf32>
    %24 = vector.extract_strided_slice %20 {offsets = [0, 1, 0], sizes = [8, 15, 128], strides = [1, 1, 1]} : vector<8x16x128xf32> to vector<8x15x128xf32>
    %25 = tpu.concatenate %24, %21 in 1 : vector<8x15x128xf32>, vector<8x1x128xf32> -> vector<8x16x128xf32>
    %26 = tpu.concatenate %23, %20, %25 in 2 : vector<8x16x128xf32>, vector<8x16x128xf32>, vector<8x16x128xf32> -> vector<8x16x384xf32>
    %27 = vector.shape_cast %26 : vector<8x16x384xf32> to vector<128x384xf32>
    %28 = arith.truncf %27 : vector<128x384xf32> to vector<128x384xbf16>
    %c0_11 = arith.constant 0 : index
    %c0_12 = arith.constant 0 : index
    %29 = vector.load %arg5[%c0_11, %c0_12] : memref<384x128xbf16, #tpu.memory_space<vmem>>, vector<384x128xbf16>
    %cst_13 = arith.constant dense<0.000000e+00> : vector<128x128xf32>
    %30 = tpu.matmul %28, %29, %cst_13 {dimension_numbers = #tpu.dot_dimension_numbers<[1], [0], [0], [1], [0, 0, 1, 1], [], []>} : vector<128x384xbf16>, vector<384x128xbf16>, vector<128x128xf32> -> vector<128x128xf32>
    %c0_14 = arith.constant 0 : index
    %c0_15 = arith.constant 0 : index
    %31 = vector.load %arg6[%c0_14, %c0_15] : memref<1x128xf32, #tpu.memory_space<vmem>>, vector<1x128xf32>
    %32 = vector.broadcast %31 : vector<1x128xf32> to vector<128x128xf32>
    %33 = arith.mulf %30, %32 : vector<128x128xf32>
    %c0_16 = arith.constant 0 : index
    %c0_17 = arith.constant 0 : index
    %34 = vector.load %arg7[%c0_16, %c0_17] : memref<1x128xf32, #tpu.memory_space<vmem>>, vector<1x128xf32>
    %35 = vector.broadcast %34 : vector<1x128xf32> to vector<128x128xf32>
    %36 = arith.addf %33, %35 : vector<128x128xf32>
    %cst_18 = arith.constant 0.00999999977 : f32
    %37 = vector.broadcast %cst_18 : f32 to vector<128x128xf32>
    %38 = arith.mulf %37, %36 : vector<128x128xf32>
    %39 = arith.maximumf %36, %38 : vector<128x128xf32>
    %40 = vector.shape_cast %39 : vector<128x128xf32> to vector<8x16x128xf32>
    %c0_19 = arith.constant 0 : index
    %c0_20 = arith.constant 0 : index
    %c0_21 = arith.constant 0 : index
    %41 = vector.load %arg8[%c0_19, %c0_20, %c0_21] : memref<8x16x128xf32, #tpu.memory_space<vmem>>, vector<8x16x128xf32>
    tpu.vector_store %arg8[%c0_19, %c0_20, %c0_21], %40 {strides = array<i32>} : memref<8x16x128xf32, #tpu.memory_space<vmem>>, vector<8x16x128xf32>,
    return
  }
  func.func @transform_0(%arg0: i32) -> (i32, i32, i32) {
    %c0_i32 = arith.constant 0 : i32
    %c0_i32_0 = arith.constant 0 : i32
    %c0_i32_1 = arith.constant 0 : i32
    %c0_i32_2 = arith.constant 0 : i32
    return %c0_i32, %c0_i32_0, %c0_i32_1 : i32, i32, i32
  }
  func.func @transform_1(%arg0: i32) -> (i32, i32) {
    %c0_i32 = arith.constant 0 : i32
    %c0_i32_0 = arith.constant 0 : i32
    %c0_i32_1 = arith.constant 0 : i32
    return %c0_i32, %c0_i32_0 : i32, i32
  }
  func.func @transform_2(%arg0: i32) -> (i32, i32) {
    %c0_i32 = arith.constant 0 : i32
    %c0_i32_0 = arith.constant 0 : i32
    %c0_i32_1 = arith.constant 0 : i32
    return %c0_i32, %c0_i32_0 : i32, i32
  }
  func.func @transform_3(%arg0: i32) -> (i32, i32) {
    %c0_i32 = arith.constant 0 : i32
    %c0_i32_0 = arith.constant 0 : i32
    %c0_i32_1 = arith.constant 0 : i32
    return %c0_i32, %c0_i32_0 : i32, i32
  }
  func.func @transform_4(%arg0: i32) -> (i32, i32) {
    %c0_i32 = arith.constant 0 : i32
    %c0_i32_0 = arith.constant 0 : i32
    %c0_i32_1 = arith.constant 0 : i32
    return %c0_i32, %c0_i32_0 : i32, i32
  }
  func.func @transform_5(%arg0: i32) -> (i32, i32) {
    %c0_i32 = arith.constant 0 : i32
    %c0_i32_0 = arith.constant 0 : i32
    %c0_i32_1 = arith.constant 0 : i32
    return %c0_i32, %c0_i32_0 : i32, i32
  }
  func.func @transform_6(%arg0: i32) -> (i32, i32) {
    %c0_i32 = arith.constant 0 : i32
    %c0_i32_0 = arith.constant 0 : i32
    %c0_i32_1 = arith.constant 0 : i32
    return %c0_i32, %c0_i32_0 : i32, i32
  }
  func.func @transform_7(%arg0: i32) -> (i32, i32, i32) {
    %c0_i32 = arith.constant 0 : i32
    %c0_i32_0 = arith.constant 0 : i32
    %c0_i32_1 = arith.constant 0 : i32
    %c0_i32_2 = arith.constant 0 : i32
    return %c0_i32, %c0_i32_0, %c0_i32_1 : i32, i32, i32
  }
}

</mosaic_0001>

<bundles_post_ra>
// kernel: unet_block_forward.1
= control target key start
LH: loop header
LB: loop body
LE: loop exit
PB: predicated region body
PF: predicated region fallthrough
CT: control target
= control target key end

     0   :  { %s1397_s11 = smov 64   ;;  %vm59_vm0 = vcmask 1040384   ;;  %vm108_vm1 = vcmask 1046528   ;;  %vm205_vm2 = vcmask 523264   ;;  %vm1398_vm4 = vmmov 1   ;;  %s2049_s0 = inlined_call_operand.vmem [shape: f32[8,16,64], index: 0, kind: input, shape index: {}]   ;;  %s2050_s1 = inlined_call_operand.vmem [shape: bf16[192,128], index: 1, kind: input, shape index: {}]   ;;  %s2051_s2 = inlined_call_operand.vmem [shape: f32[1,128], index: 2, kind: input, shape index: {}]   ;;  %s2052_s3 = inlined_call_operand.vmem [shape: f32[1,128], index: 3, kind: input, shape index: {}]   ;;  %s2053_s4 = inlined_call_operand.vmem [shape: bf16[384,128], index: 4, kind: input, shape index: {}]   ;;  %s2054_s5 = inlined_call_operand.vmem [shape: f32[1,128], index: 5, kind: input, shape index: {}]   ;;  %s2055_s6 = inlined_call_operand.vmem [shape: f32[1,128], index: 6, kind: input, shape index: {}]   ;;  %s2056_s7 = inlined_call_operand.vmem [shape: f32[8,16,128], index: 7, kind: output, shape index: {}]  }
   0x1   :  { %v1442_v0 = vld [vmem:[%s2049_s0] sm:$0xff]  ;;  %v1447_v1 = vld [vmem:[%s2049_s0 + $0x8] sm:$0xff]  ;;  %v1310_v8 = vld [vmem:[%s2050_s1 + $0x38] sm:$0xff] }
   0x2   :  { %v1353_v2 = vpack.i.bf16 %v1447_v1, %v1442_v0  ;;  %v1454_v3 = vld [vmem:[%s2049_s0 + $0x20] sm:$0xff]  ;;  %v1459_v4 = vld [vmem:[%s2049_s0 + $0x28] sm:$0xff]  ;;  %v1480_v9 = vld [vmem:[%s2049_s0 + $0x10] sm:$0xff]  ;;  %358 = vmatpush.bf16.msra.mxu0 %v1310_v8  ;;  %v61_v31 = vrot.slane %v1447_v1, 7  ;;  %v60_v32 = vrot.slane %v1442_v0, 7 }
   0x3   :  { %v1464_v5 = vld [vmem:[%s2049_s0 + $0x40] sm:$0xff]  ;;  %v1363_v6 = vpack.i.bf16 %v1459_v4, %v1454_v3  ;;  %v1472_v7 = vld [vmem:[%s2049_s0 + $0x48] sm:$0xff]  ;;  %v1485_v10 = vld [vmem:[%s2049_s0 + $0x18] sm:$0xff]  ;;  %v112_v38 = vrot.slane %v1480_v9, 1  ;;  %v67_v41 = vrot.slane %v1459_v4, 7  ;;  %v66_v42 = vrot.slane %v1454_v3, 7 }
   0x4   :  { %1354 = vrot.lane.b32.xlu0 %v1353_v2, %s1397_s11  ;;  %v1373_v11 = vpack.i.bf16 %v1472_v7, %v1464_v5  ;;  %v1309_v12 = vld [vmem:[%s2050_s1 + $0x30] sm:$0xff]  ;;  %v1501_v14 = vld [vmem:[%s2049_s0 + $0x38] sm:$0xff]  ;;  %v1358_v15 = vpack.i.bf16 %v1485_v10, %v1480_v9  ;;  %v1308_v19 = vld [vmem:[%s2050_s1 + $0x28] sm:$0xff]  ;;  %v62_v34 = vsel %vm59_vm0, %v60_v32, %v61_v31  ;;  %v113_v40 = vrot.slane %v1485_v10, 1 }
   0x5   :  { %1364 = vrot.lane.b32.xlu1 %v1363_v6, %s1397_s11  ;;  %v1496_v13 = vld [vmem:[%s2049_s0 + $0x30] sm:$0xff]  ;;  %v1514_v17 = vld [vmem:[%s2049_s0 + $0x58] sm:$0xff]  ;;  %v1527_v21 = vld [vmem:[%s2049_s0 + $0x60] sm:$0xff]  ;;  %v68_v46 = vsel %vm59_vm0, %v66_v42, %v67_v41  ;;  %v116_v47 = vrot.slane %v1459_v4, 1  ;;  %v115_v48 = vrot.slane %v1454_v3, 1  ;;  %v100_v50 = vsel %vm59_vm0, 0.0, %v60_v32 }
   0x6   :  { %1374 = vrot.lane.b32.xlu2 %v1373_v11, %s1397_s11  ;;  %v1509_v16 = vld [vmem:[%s2049_s0 + $0x50] sm:$0xff]  ;;  %v1368_v18 = vpack.i.bf16 %v1501_v14, %v1496_v13  ;;  %359 = vmatpush.bf16.msra.mxu0 %v1309_v12  ;;  %v1532_v22 = vld [vmem:[%s2049_s0 + $0x68] sm:$0xff]  ;;  %v1307_v23 = vld [vmem:[%s2050_s1 + $0x20] sm:$0xff]  ;;  %v114_v43 = vsel %vm108_vm1, %v112_v38, %v113_v40  ;;  %v150_v44 = vsel %vm108_vm1, %v113_v40, 0.0  ;;  %v102_v54 = vsel %vm59_vm0, 0.0, %v66_v42 }
   0x7   :  { %v1378_v20 = vpack.i.bf16 %v1514_v17, %v1509_v16  ;;  %v1541_v24 = vld [vmem:[%s2049_s0 + $0x70] sm:$0xff]  ;;  %v1546_v25 = vld [vmem:[%s2049_s0 + $0x78] sm:$0xff]  ;;  %v1383_v26 = vpack.i.bf16 %v1532_v22, %v1527_v21  ;;  %v1304_v30 = vld [vmem:[%s2050_s1 + $0x8] sm:$0xff]  ;;  %v225_v45 = vpack.c.bf16 %v150_v44, %v114_v43  ;;  %v118_v59 = vrot.slane %v1496_v13, 1 }
   0x8   :  { %v1306_v27 = vld [vmem:[%s2050_s1 + $0x18] sm:$0xff]  ;;  %v1388_v28 = vpack.i.bf16 %v1546_v25, %v1541_v24  ;;  %v1305_v29 = vld [vmem:[%s2050_s1 + $0x10] sm:$0xff]  ;;  %v1303_v33 = vld [vmem:[%s2050_s1] sm:$0xff]  ;;  %v117_v61 = vsel %vm108_vm1, %v115_v48, %v116_v47  ;;  %v151_v62 = vsel %vm108_vm1, %v116_v47, 0.0  ;;  %v119_v6 = vrot.slane %v1501_v14, 1 }
   0x9   :  { %v1314_v35 = vld [vmem:[%s2050_s1 + $0x58] sm:$0xff]  ;;  %v1313_v36 = vld [vmem:[%s2050_s1 + $0x50] sm:$0xff]  ;;  %v1312_v37 = vld [vmem:[%s2050_s1 + $0x48] sm:$0xff]  ;;  %v227_v3 = vpack.c.bf16 %v151_v62, %v117_v61  ;;  %v64_v8 = vrot.slane %v1485_v10, 7  ;;  %v63_v12 = vrot.slane %v1480_v9, 7  ;;  %v122_v9 = vrot.slane %v1472_v7, 1 }
   0xa   :  { %360 = vmatpush.bf16.msra.mxu0 %v1308_v19  ;;  %1339 = vmatpush.bf16.msra.mxu1 %v1314_v35  ;;  %v1311_v39 = vld [vmem:[%s2050_s1 + $0x40] sm:$0xff]  ;;  %v121_v31 = vrot.slane %v1464_v5, 1  ;;  %v125_v43 = vrot.slane %v1514_v17, 1  ;;  %v70_v44 = vrot.slane %v1501_v14, 7  ;;  %v131_v61 = vrot.slane %v1546_v25, 1  ;;  %vm1247_vm3 = vmneg %vm59_vm0 }
   0xb   :  { %1340 = vmatpush.bf16.msra.mxu2 %v1314_v35  ;;  %1341 = vmatpush.bf16.msra.mxu3 %v1314_v35  ;;  %v76_v62 = vrot.slane %v1514_v17, 7  ;;  %vm1886_vm5 = vmpackc.low %vm1398_vm4, %vm1247_vm3 }
   0xc   :  { %1359 = vrot.lane.b32.xlu0 %v1358_v15, %s1397_s11  ;;  %v120_v15 = vsel %vm108_vm1, %v118_v59, %v119_v6  ;;  %v154_v48 = vsel %vm108_vm1, %v125_v43, 0.0  ;;  %vm1893_vm6 = vmpackc.low %vm108_vm1, %vm1398_vm4 }
   0xd   :  { %1369 = vrot.lane.b32.xlu1 %v1368_v18, %s1397_s11  ;;  %v152_v18 = vsel %vm108_vm1, %v119_v6, 0.0 }
   0xe   :  { %1379 = vrot.lane.b32.xlu2 %v1378_v20, %s1397_s11  ;;  %361 = vmatpush.bf16.msra.mxu0 %v1307_v23  ;;  %v229_v19 = vpack.c.bf16 %v152_v18, %v120_v15 }
   0xf   :  { %1342 = vmatpush.bf16.msra.mxu1 %v1313_v36  ;;  %1343 = vmatpush.bf16.msra.mxu2 %v1313_v36 }
  0x10   :  { %1344 = vmatpush.bf16.msra.mxu3 %v1313_v36 }
  0x12   :  { %362 = vmatpush.bf16.msra.mxu0 %v1306_v27  ;;  %v101_v27 = vsel %vm59_vm0, 0.0, %v63_v12 }
  0x13   :  { %1345 = vmatpush.bf16.msra.mxu1 %v1312_v37  ;;  %1346 = vmatpush.bf16.msra.mxu2 %v1312_v37 }
  0x14   :  { %1384 = vrot.lane.b32.xlu0 %v1383_v26, %s1397_s11  ;;  %1347 = vmatpush.bf16.msra.mxu3 %v1312_v37  ;;  %v65_v26 = vsel %vm59_vm0, %v63_v12, %v64_v8 }
  0x15   :  { %1389 = vrot.lane.b32.xlu1 %v1388_v28, %s1397_s11 }
  0x16   :  { %363 = vmatpush.bf16.msra.mxu0 %v1305_v29  ;;  %v73_v29 = vrot.slane %v1472_v7, 7 }
  0x17   :  { %1348 = vmatpush.bf16.msra.mxu1 %v1311_v39  ;;  %1349 = vmatpush.bf16.msra.mxu2 %v1311_v39 }
  0x18   :  { %1350 = vmatpush.bf16.msra.mxu3 %v1311_v39 }
  0x1a   :  { %364 = vmatpush.bf16.msra.mxu0 %v1304_v30  ;;  %1144 = vmatmul.msk.bf16.vlgmr.msra.gmra.mxu1 %vm205_vm2, %v225_v45  ;;  %v72_v30 = vrot.slane %v1464_v5, 7  ;;  %v124_v5 = vrot.slane %v1509_v16, 1 }
  0x1b   :  { %1146 = vmatmul.msk.bf16.vlgmr.msra.gmra.mxu2 %vm205_vm2, %v229_v19 }
  0x1c   :  { %v126_v47 = vsel %vm108_vm1, %v124_v5, %v125_v43 }
  0x1e   :  { %365 = vmatpush.bf16.msra.mxu0 %v1303_v33 }
  0x22   :  { %411 = vmatpush.bf16.msrb.mxu0 %v1314_v35  ;;  %v153_v35 = vsel %vm108_vm1, %v122_v9, 0.0 }
  0x26   :  { %412 = vmatpush.bf16.msrb.mxu0 %v1313_v36  ;;  %v74_v36 = vsel %vm59_vm0, %v72_v30, %v73_v29  ;;  %v110_v29 = vrot.slane %v1447_v1, 1 }
  0x2a   :  { %413 = vmatpush.bf16.msrb.mxu0 %v1312_v37  ;;  %1145 = vmatmul.msk.bf16.gmra.mxu1 %vm205_vm2, %v227_v3  ;;  %v104_v37 = vsel %vm59_vm0, 0.0, %v72_v30 }
  0x2e   :  { %414 = vmatpush.bf16.msrb.mxu0 %v1311_v39 }
  0x60   :  { %v1375_v33 = vpop.permute.xlu2 %1374 }
  0x61   :  { %v1377_v38 = vunpack.i.h.bf16 %v1375_v33  ;;  %v1376_v39 = vunpack.i.l.bf16 %v1375_v33 }
  0x63   :  { %v214_v7 = vsel %vm205_vm2, %v104_v37, %v1376_v39  ;;  %v215_v41 = vsel %vm205_vm2, %v74_v36, %v1377_v38  ;;  %v81_v36 = vrot.slane %v1541_v24, 7 }
  0x64   :  { %v230_v42 = vpack.c.bf16 %v215_v41, %v214_v7 }
  0x65   :  { %v107_v38 = vsel %vm59_vm0, 0.0, %v81_v36 }
  0x76   :  { %v1355_v49 = vpop.permute.xlu0 %1354 }
  0x77   :  { %v1357_v51 = vunpack.i.h.bf16 %v1355_v49  ;;  %v1356_v52 = vunpack.i.l.bf16 %v1355_v49  ;;  %v1365_v53 = vpop.permute.xlu1 %1364  ;;  %v233_v49 = vpack.c.bf16 %v154_v48, %v126_v47 }
  0x78   :  { %v1367_v57 = vunpack.i.h.bf16 %v1365_v53  ;;  %v1366_v58 = vunpack.i.l.bf16 %v1365_v53 }
  0x79   :  { %v206_v55 = vsel %vm205_vm2, %v100_v50, %v1356_v52  ;;  %v207_v56 = vsel %vm205_vm2, %v62_v34, %v1357_v51  ;;  %v123_v34 = vsel %vm108_vm1, %v121_v31, %v122_v9  ;;  %v109_v9 = vrot.slane %v1442_v0, 1 }
  0x7a   :  { %v222_v60 = vpack.c.bf16 %v207_v56, %v206_v55  ;;  %v210_v63 = vsel %vm205_vm2, %v102_v54, %v1366_v58  ;;  %v211_v2 = vsel %vm205_vm2, %v68_v46, %v1367_v57  ;;  %v231_v40 = vpack.c.bf16 %v153_v35, %v123_v34 }
  0x7b   :  { %v226_v4 = vpack.c.bf16 %v211_v2, %v210_v63  ;;  %v69_v46 = vrot.slane %v1496_v13, 7  ;;  %v127_v13 = vrot.slane %v1527_v21, 1  ;;  %v128_v56 = vrot.slane %v1532_v22, 1  ;;  %v1380_v63 = vpop.permute.xlu2 %1379 }
  0x7c   :  { %366 = vmatmul.bf16.vlgmr.msra.gmra.mxu0 %v222_v60  ;;  %1147 = vmatmul.msk.bf16.gmra.mxu2 %vm205_vm2, %v231_v40  ;;  %v130_v60 = vrot.slane %v1541_v24, 1  ;;  %v75_v2 = vrot.slane %v1509_v16, 7  ;;  %v1382_v8 = vunpack.i.h.bf16 %v1380_v63  ;;  %v79_v16 = vrot.slane %v1532_v22, 7  ;;  %v1674_v24 = vld [vmem:[%s2051_s2] ss:$0 sm:$0xff] }
  0x7d   :  { %v71_v52 = vsel %vm59_vm0, %v69_v46, %v70_v44  ;;  %v103_v53 = vsel %vm59_vm0, 0.0, %v69_v46  ;;  %v129_v57 = vsel %vm108_vm1, %v127_v13, %v128_v56  ;;  %v155_v58 = vsel %vm108_vm1, %v128_v56, 0.0  ;;  %v1679_v44 = vld [vmem:[%s2052_s3] ss:$0 sm:$0xff] }
  0x7e   :  { %v1360_v11 = vpop.permute.xlu0 %1359  ;;  %v235_v59 = vpack.c.bf16 %v155_v58, %v129_v57  ;;  %v132_v3 = vsel %vm108_vm1, %v130_v60, %v131_v61  ;;  %v77_v12 = vsel %vm59_vm0, %v75_v2, %v76_v62  ;;  %v105_v15 = vsel %vm59_vm0, 0.0, %v75_v2 }
  0x7f   :  { %v1362_v20 = vunpack.i.h.bf16 %v1360_v11  ;;  %v1361_v23 = vunpack.i.l.bf16 %v1360_v11  ;;  %v1370_v45 = vpop.permute.xlu1 %1369  ;;  %v1381_v11 = vunpack.i.l.bf16 %v1380_v63  ;;  %v217_v17 = vsel %vm205_vm2, %v77_v12, %v1382_v8 }
  0x80   :  { %v1372_v50 = vunpack.i.h.bf16 %v1370_v45  ;;  %v1371_v51 = vunpack.i.l.bf16 %v1370_v45  ;;  %1149 = vmatmul.msk.bf16.vlgmr.msra.gmra.mxu3 %vm205_vm2, %v235_v59  ;;  %v111_v33 = vsel %vm108_vm1, %v109_v9, %v110_v29  ;;  %v82_v34 = vrot.slane %v1546_v25, 7 }
  0x81   :  { %v208_v28 = vsel %vm205_vm2, %v101_v27, %v1361_v23  ;;  %v209_v10 = vsel %vm205_vm2, %v65_v26, %v1362_v20  ;;  %v216_v18 = vsel %vm205_vm2, %v105_v15, %v1381_v11  ;;  %v78_v23 = vrot.slane %v1527_v21, 7 }
  0x82   :  { %v224_v32 = vpack.c.bf16 %v209_v10, %v208_v28  ;;  %v212_v54 = vsel %vm205_vm2, %v103_v53, %v1371_v51  ;;  %v213_v14 = vsel %vm205_vm2, %v71_v52, %v1372_v50  ;;  %v232_v19 = vpack.c.bf16 %v217_v17, %v216_v18 }
  0x83   :  { %v228_v55 = vpack.c.bf16 %v213_v14, %v212_v54  ;;  %v80_v28 = vsel %vm59_vm0, %v78_v23, %v79_v16  ;;  %v106_v10 = vsel %vm59_vm0, 0.0, %v78_v23  ;;  %v83_v0 = vsel %vm59_vm0, %v81_v36, %v82_v34 }
  0x86   :  { %v1385_v20 = vpop.permute.xlu0 %1384 }
  0x87   :  { %v1387_v26 = vunpack.i.h.bf16 %v1385_v20  ;;  %v1386_v27 = vunpack.i.l.bf16 %v1385_v20  ;;  %v1390_v35 = vpop.permute.xlu1 %1389 }
  0x88   :  { %v1392_v37 = vunpack.i.h.bf16 %v1390_v35  ;;  %v1391_v1 = vunpack.i.l.bf16 %v1390_v35 }
  0x89   :  { %v218_v30 = vsel %vm205_vm2, %v106_v10, %v1386_v27  ;;  %v219_v31 = vsel %vm205_vm2, %v80_v28, %v1387_v26 }
  0x8a   :  { %v234_v22 = vpack.c.bf16 %v219_v31, %v218_v30  ;;  %v220_v39 = vsel %vm205_vm2, %v107_v38, %v1391_v1  ;;  %v221_v40 = vsel %vm205_vm2, %v83_v0, %v1392_v37 }
  0x8b   :  { %v236_v7 = vpack.c.bf16 %v221_v40, %v220_v39 }
  0x8c   :  { %371 = vmatmul.bf16.gmra.mxu0 %v224_v32  ;;  %1148 = vmatmul.msk.bf16.gmra.mxu2 %vm205_vm2, %v233_v49  ;;  %v149_v32 = vsel %vm108_vm1, %v110_v29, 0.0 }
  0x8d   :  { %v223_v21 = vpack.c.bf16 %v149_v32, %v111_v33 }
  0x9c   :  { %376 = vmatmul.bf16.gmra.mxu0 %v226_v4  ;;  %v156_v4 = vsel %vm108_vm1, %v131_v61, 0.0 }
  0x9d   :  { %v237_v6 = vpack.c.bf16 %v156_v4, %v132_v3 }
  0x9e   :  { %v431_v63 = vpop.f32.mrf.mxu2 }
  0x9f   :  { %1150 = vmatmul.msk.bf16.gmra.mxu3 %vm205_vm2, %v237_v6 }
  0xa6   :  { %v433_v16 = vpop.f32.mrf.mxu2 }
  0xac   :  { %381 = vmatmul.bf16.gmra.mxu0 %v228_v55 }
  0xbc   :  { %386 = vmatmul.bf16.gmra.mxu0 %v230_v42  ;;  %v421_v42 = vpop.f32.mrf.mxu1 }
  0xc4   :  { %v423_v45 = vpop.f32.mrf.mxu1 }
  0xcc   :  { %391 = vmatmul.bf16.gmra.mxu0 %v232_v19  ;;  %v426_v52 = vpop.f32.mrf.mxu1 }
  0xd4   :  { %v428_v6 = vpop.f32.mrf.mxu1 }
  0xdc   :  { %396 = vmatmul.bf16.gmra.mxu0 %v234_v22 }
  0xec   :  { %401 = vmatmul.bf16.gmra.mxu0 %v236_v7 }
  0xf9   :  { %v1666_v41 = vpop.f32.mrf.mxu0 }
  0xfc   :  { %1143 = vmatmul.msk.bf16.vlgmr.msrb.gmra.mxu0 %vm205_vm2, %v223_v21 }
  0xff   :  { %v436_v37 = vpop.f32.mrf.mxu2 }
 0x101   :  { %v1669_v25 = vpop.f32.mrf.mxu0 }
 0x109   :  { %v372_v5 = vpop.f32.mrf.mxu0 }
 0x10a   :  { %v422_v43 = vadd.f32 %v421_v42, %v372_v5 }
 0x10c   :  { %v462_v46 = vmul.f32 %v1674_v24, %v422_v43 }
 0x10e   :  { %v482_v47 = vadd.f32 %v1679_v44, %v462_v46 }
 0x110   :  { %v498_v50 = vmul.f32 0.01, %v482_v47 }
 0x111   :  { %v374_v48 = vpop.f32.mrf.mxu0 }
 0x112   :  { %v424_v49 = vadd.f32 %v423_v45, %v374_v48  ;;  %v1685_v54 = vmax.f32 %v482_v47, %v498_v50  ;;  %v438_v45 = vpop.f32.mrf.mxu2 }
 0x114   :  { %v463_v51 = vmul.f32 %v1674_v24, %v424_v49  ;;  %v547_v57 = vrot.slane %v1685_v54, 7  ;;  %v595_v58 = vrot.slane %v1685_v54, 1 }
 0x116   :  { %v483_v53 = vadd.f32 %v1679_v44, %v463_v51 }
 0x118   :  { %v499_v14 = vmul.f32 0.01, %v483_v53 }
 0x119   :  { %v377_v55 = vpop.f32.mrf.mxu0 }
 0x11a   :  { %v427_v13 = vadd.f32 %v426_v52, %v377_v55  ;;  %v1687_v56 = vmax.f32 %v483_v53, %v499_v14 }
 0x11c   :  { %v464_v59 = vmul.f32 %v1674_v24, %v427_v13  ;;  %v644_v60 = vpack.c.bf16 %v1687_v56, %v1685_v54  ;;  %v548_v61 = vrot.slane %v1687_v56, 7  ;;  %v596_v62 = vrot.slane %v1687_v56, 1 }
 0x11e   :  { %v549_v2 = vsel %vm59_vm0, %v547_v57, %v548_v61  ;;  %v597_v3 = vsel %vm108_vm1, %v595_v58, %v596_v62  ;;  %v484_v4 = vadd.f32 %v1679_v44, %v464_v59 }
 0x11f   :  { %v1699_v8 = vpack.c.bf16 %v549_v2, %v547_v57  ;;  %v1701_v11 = vpack.c.bf16 %v596_v62, %v597_v3  ;;  %v441_v62 = vpop.f32.mrf.mxu2 }
 0x120   :  { %v500_v18 = vmul.f32 0.01, %v484_v4 }
 0x121   :  { %v379_v12 = vpop.f32.mrf.mxu0 }
 0x122   :  { %v429_v15 = vadd.f32 %v428_v6, %v379_v12  ;;  %v1705_v20 = vmax.f32 %v484_v4, %v500_v18  ;;  %v1322_v4 = vld [vmem:[%s2053_s4 + $0x38] sm:$0xff] }
 0x123   :  { %856 = vmatpush.bf16.msrb.mxu2 %v1322_v4 }
 0x124   :  { %v465_v17 = vmul.f32 %v1674_v24, %v429_v15  ;;  %v550_v10 = vrot.slane %v1705_v20, 7  ;;  %v598_v29 = vrot.slane %v1705_v20, 1  ;;  %v1321_v15 = vld [vmem:[%s2053_s4 + $0x30] sm:$0xff] }
 0x126   :  { %v485_v19 = vadd.f32 %v1679_v44, %v465_v17 }
 0x127   :  { %857 = vmatpush.bf16.msrb.mxu2 %v1321_v15 }
 0x128   :  { %v501_v23 = vmul.f32 0.01, %v485_v19 }
 0x129   :  { %v382_v26 = vpop.f32.mrf.mxu0 }
 0x12a   :  { %v432_v27 = vadd.f32 %v431_v63, %v382_v26  ;;  %v1707_v28 = vmax.f32 %v485_v19, %v501_v23 }
 0x12c   :  { %v466_v9 = vmul.f32 %v1674_v24, %v432_v27  ;;  %v647_v30 = vpack.c.bf16 %v1707_v28, %v1705_v20  ;;  %v551_v31 = vrot.slane %v1707_v28, 7  ;;  %v599_v32 = vrot.slane %v1707_v28, 1 }
 0x12e   :  { %v552_v22 = vsel %vm59_vm0, %v550_v10, %v551_v31  ;;  %v600_v33 = vsel %vm108_vm1, %v598_v29, %v599_v32  ;;  %v486_v21 = vadd.f32 %v1679_v44, %v466_v9 }
 0x12f   :  { %v1719_v34 = vpack.c.bf16 %v552_v22, %v550_v10  ;;  %v1721_v35 = vpack.c.bf16 %v599_v32, %v600_v33  ;;  %v1330_v10 = vld [vmem:[%s2053_s4 + $0x78] sm:$0xff]  ;;  %v443_v32 = vpop.f32.mrf.mxu2 }
 0x130   :  { %v502_v0 = vmul.f32 0.01, %v486_v21  ;;  %905 = vmatpush.bf16.msrb.mxu3 %v1330_v10 }
 0x131   :  { %v384_v36 = vpop.f32.mrf.mxu0 }
 0x132   :  { %v434_v1 = vadd.f32 %v433_v16, %v384_v36  ;;  %v1725_v40 = vmax.f32 %v486_v21, %v502_v0  ;;  %v1320_v21 = vld [vmem:[%s2053_s4 + $0x28] sm:$0xff]  ;;  %v1338_v36 = vld [vmem:[%s2053_s4 + $0xb8] sm:$0xff]  ;;  %v1329_v0 = vld [vmem:[%s2053_s4 + $0x70] sm:$0xff] }
 0x133   :  { %858 = vmatpush.bf16.msrb.mxu2 %v1320_v21  ;;  %954 = vmatpush.bf16.msrb.mxu1 %v1338_v36  ;;  %v1317_v21 = vld [vmem:[%s2053_s4 + $0x10] sm:$0xff] }
 0x134   :  { %v467_v38 = vmul.f32 %v1674_v24, %v434_v1  ;;  %v553_v46 = vrot.slane %v1725_v40, 7  ;;  %v601_v47 = vrot.slane %v1725_v40, 1  ;;  %v446_v1 = vpop.f32.mrf.mxu3  ;;  %906 = vmatpush.bf16.msrb.mxu3 %v1329_v0  ;;  %v1333_v36 = vld [vmem:[%s2053_s4 + $0x90] sm:$0xff] }
 0x136   :  { %v487_v39 = vadd.f32 %v1679_v44, %v467_v38 }
 0x138   :  { %v503_v7 = vmul.f32 0.01, %v487_v39 }
 0x139   :  { %v387_v42 = vpop.f32.mrf.mxu0 }
 0x13a   :  { %v437_v5 = vadd.f32 %v436_v37, %v387_v42  ;;  %v1727_v43 = vmax.f32 %v487_v39, %v503_v7  ;;  %v1337_v42 = vld [vmem:[%s2053_s4 + $0xb0] sm:$0xff] }
 0x13b   :  { %955 = vmatpush.bf16.msrb.mxu1 %v1337_v42  ;;  %v1332_v42 = vld [vmem:[%s2053_s4 + $0x88] sm:$0xff] }
 0x13c   :  { %v468_v48 = vmul.f32 %v1674_v24, %v437_v5  ;;  %v650_v49 = vpack.c.bf16 %v1727_v43, %v1725_v40  ;;  %v554_v50 = vrot.slane %v1727_v43, 7  ;;  %v602_v51 = vrot.slane %v1727_v43, 1  ;;  %v1328_v5 = vld [vmem:[%s2053_s4 + $0x68] sm:$0xff] }
 0x13d   :  { %907 = vmatpush.bf16.msrb.mxu3 %v1328_v5 }
 0x13e   :  { %v555_v52 = vsel %vm59_vm0, %v553_v46, %v554_v50  ;;  %v603_v53 = vsel %vm108_vm1, %v601_v47, %v602_v51  ;;  %v488_v14 = vadd.f32 %v1679_v44, %v468_v48  ;;  %v1319_v48 = vld [vmem:[%s2053_s4 + $0x20] sm:$0xff]  ;;  %v1336_v50 = vld [vmem:[%s2053_s4 + $0xa8] sm:$0xff] }
 0x13f   :  { %v1739_v55 = vpack.c.bf16 %v555_v52, %v553_v46  ;;  %v1741_v13 = vpack.c.bf16 %v602_v51, %v603_v53  ;;  %v1327_v52 = vld [vmem:[%s2053_s4 + $0x60] sm:$0xff]  ;;  %859 = vmatpush.bf16.msrb.mxu2 %v1319_v48  ;;  %956 = vmatpush.bf16.msrb.mxu1 %v1336_v50 }
 0x140   :  { %v504_v59 = vmul.f32 0.01, %v488_v14 }
 0x141   :  { %v389_v57 = vpop.f32.mrf.mxu0  ;;  %908 = vmatpush.bf16.msrb.mxu3 %v1327_v52 }
 0x142   :  { %v439_v58 = vadd.f32 %v438_v45, %v389_v57  ;;  %v1745_v2 = vmax.f32 %v488_v14, %v504_v59  ;;  %v448_v57 = vpop.f32.mrf.mxu3 }
 0x144   :  { %v469_v61 = vmul.f32 %v1674_v24, %v439_v58  ;;  %v556_v17 = vrot.slane %v1745_v2, 7  ;;  %v604_v19 = vrot.slane %v1745_v2, 1 }
 0x146   :  { %v489_v63 = vadd.f32 %v1679_v44, %v469_v61 }
 0x148   :  { %v505_v3 = vmul.f32 0.01, %v489_v63 }
 0x149   :  { %v392_v6 = vpop.f32.mrf.mxu0 }
 0x14a   :  { %v442_v12 = vadd.f32 %v441_v62, %v392_v6  ;;  %v1753_v18 = vmax.f32 %v489_v63, %v505_v3  ;;  %v1335_v62 = vld [vmem:[%s2053_s4 + $0xa0] sm:$0xff]  ;;  %v1326_v6 = vld [vmem:[%s2053_s4 + $0x58] sm:$0xff] }
 0x14b   :  { %957 = vmatpush.bf16.msrb.mxu1 %v1335_v62  ;;  %909 = vmatpush.bf16.msrb.mxu3 %v1326_v6 }
 0x14c   :  { %v470_v16 = vmul.f32 %v1674_v24, %v442_v12  ;;  %v653_v23 = vpack.c.bf16 %v1753_v18, %v1745_v2  ;;  %v557_v26 = vrot.slane %v1753_v18, 7  ;;  %v605_v27 = vrot.slane %v1753_v18, 1 }
 0x14e   :  { %v558_v29 = vsel %vm59_vm0, %v556_v17, %v557_v26  ;;  %v606_v9 = vsel %vm108_vm1, %v604_v19, %v605_v27  ;;  %v490_v31 = vadd.f32 %v1679_v44, %v470_v16  ;;  %v1318_v26 = vld [vmem:[%s2053_s4 + $0x18] sm:$0xff] }
 0x14f   :  { %v1768_v22 = vpack.c.bf16 %v558_v29, %v556_v17  ;;  %v1770_v33 = vpack.c.bf16 %v605_v27, %v606_v9  ;;  %v1334_v27 = vld [vmem:[%s2053_s4 + $0x98] sm:$0xff]  ;;  %v1325_v29 = vld [vmem:[%s2053_s4 + $0x50] sm:$0xff]  ;;  %860 = vmatpush.bf16.msrb.mxu2 %v1318_v26 }
 0x150   :  { %v506_v39 = vmul.f32 0.01, %v490_v31  ;;  %958 = vmatpush.bf16.msrb.mxu1 %v1334_v27  ;;  %910 = vmatpush.bf16.msrb.mxu3 %v1325_v29 }
 0x151   :  { %v394_v37 = vpop.f32.mrf.mxu0 }
 0x152   :  { %v444_v38 = vadd.f32 %v443_v32, %v394_v37  ;;  %v1789_v46 = vmax.f32 %v490_v31, %v506_v39  ;;  %v451_v37 = vpop.f32.mrf.mxu3 }
 0x153   :  { %861 = vmatpush.bf16.msrb.mxu2 %v1317_v21 }
 0x154   :  { %v471_v7 = vmul.f32 %v1674_v24, %v444_v38  ;;  %v559_v58 = vrot.slane %v1789_v46, 7  ;;  %v607_v59 = vrot.slane %v1789_v46, 1  ;;  %959 = vmatpush.bf16.msrb.mxu1 %v1333_v36 }
 0x156   :  { %v491_v45 = vadd.f32 %v1679_v44, %v471_v7  ;;  %v1316_v7 = vld [vmem:[%s2053_s4 + $0x8] sm:$0xff] }
 0x157   :  { %862 = vmatpush.bf16.msrb.mxu2 %v1316_v7 }
 0x158   :  { %v507_v47 = vmul.f32 0.01, %v491_v45  ;;  %960 = vmatpush.bf16.msrb.mxu1 %v1332_v42 }
 0x159   :  { %v397_v51 = vpop.f32.mrf.mxu0 }
 0x15a   :  { %v447_v53 = vadd.f32 %v446_v1, %v397_v51  ;;  %v1800_v14 = vmax.f32 %v491_v45, %v507_v47  ;;  %v1324_v1 = vld [vmem:[%s2053_s4 + $0x48] sm:$0xff]  ;;  %v1323_v45 = vld [vmem:[%s2053_s4 + $0x40] sm:$0xff]  ;;  %v453_v6 = vpop.f32.mrf.mxu3 }
 0x15b   :  { %911 = vmatpush.bf16.msrb.mxu3 %v1324_v1 }
 0x15c   :  { %v472_v61 = vmul.f32 %v1674_v24, %v447_v53  ;;  %v656_v63 = vpack.c.bf16 %v1800_v14, %v1789_v46  ;;  %v560_v3 = vrot.slane %v1800_v14, 7  ;;  %v608_v4 = vrot.slane %v1800_v14, 1  ;;  %v1315_v53 = vld [vmem:[%s2053_s4] sm:$0xff] }
 0x15d   :  { %863 = vmatpush.bf16.msrb.mxu2 %v1315_v53 }
 0x15e   :  { %v561_v12 = vsel %vm59_vm0, %v559_v58, %v560_v3  ;;  %v609_v15 = vsel %vm108_vm1, %v607_v59, %v608_v4  ;;  %v492_v17 = vadd.f32 %v1679_v44, %v472_v61 }
 0x15f   :  { %v1818_v19 = vpack.c.bf16 %v561_v12, %v559_v58  ;;  %v1820_v16 = vpack.c.bf16 %v608_v4, %v609_v15  ;;  %912 = vmatpush.bf16.msrb.mxu3 %v1323_v45 }
 0x160   :  { %v508_v31 = vmul.f32 0.01, %v492_v17 }
 0x161   :  { %v399_v10 = vpop.f32.mrf.mxu0 }
 0x162   :  { %v449_v9 = vadd.f32 %v448_v57, %v399_v10  ;;  %v1842_v38 = vmax.f32 %v492_v17, %v508_v31  ;;  %v1331_v57 = vld [vmem:[%s2053_s4 + $0x80] sm:$0xff] }
 0x163   :  { %961 = vmatpush.bf16.msrb.mxu1 %v1331_v57 }
 0x164   :  { %v473_v32 = vmul.f32 %v1674_v24, %v449_v9  ;;  %v562_v50 = vrot.slane %v1842_v38, 7  ;;  %v610_v51 = vrot.slane %v1842_v38, 1 }
 0x166   :  { %v493_v0 = vadd.f32 %v1679_v44, %v473_v32 }
 0x168   :  { %v509_v39 = vmul.f32 0.01, %v493_v0 }
 0x169   :  { %v402_v5 = vpop.f32.mrf.mxu0 }
 0x16a   :  { %v452_v47 = vadd.f32 %v451_v37, %v402_v5  ;;  %v1853_v48 = vmax.f32 %v493_v0, %v509_v39 }
 0x16c   :  { %v474_v52 = vmul.f32 %v1674_v24, %v452_v47  ;;  %v659_v58 = vpack.c.bf16 %v1853_v48, %v1842_v38  ;;  %v563_v59 = vrot.slane %v1853_v48, 7  ;;  %v611_v61 = vrot.slane %v1853_v48, 1 }
 0x16e   :  { %v564_v62 = vsel %vm59_vm0, %v562_v50, %v563_v59  ;;  %v612_v3 = vsel %vm108_vm1, %v610_v51, %v611_v61  ;;  %v494_v4 = vadd.f32 %v1679_v44, %v474_v52 }
 0x16f   :  { %v1871_v12 = vpack.c.bf16 %v564_v62, %v562_v50  ;;  %v1873_v15 = vpack.c.bf16 %v611_v61, %v612_v3 }
 0x170   :  { %v510_v27 = vmul.f32 0.01, %v494_v4 }
 0x171   :  { %v404_v17 = vpop.f32.mrf.mxu0 }
 0x172   :  { %v454_v26 = vadd.f32 %v453_v6, %v404_v17  ;;  %v526_v9 = vmax.f32 %v494_v4, %v510_v27 }
 0x174   :  { %v475_v10 = vmul.f32 %v1674_v24, %v454_v26  ;;  %v565_v37 = vrot.slane %v526_v9, 7  ;;  %v613_v1 = vrot.slane %v526_v9, 1 }
 0x176   :  { %v495_v29 = vadd.f32 %v1679_v44, %v475_v10 }
 0x178   :  { %v511_v31 = vmul.f32 0.01, %v495_v29 }
 0x179   :  { %v416_v32 = vpop.f32.mrf.mxu0 }
 0x17a   :  { %v417_v21 = vadd.f32 %v416_v32, %v1666_v41  ;;  %v527_v36 = vmax.f32 %v495_v29, %v511_v31 }
 0x17c   :  { %v460_v0 = vmul.f32 %v1674_v24, %v417_v21  ;;  %v662_v39 = vpack.c.bf16 %v527_v36, %v526_v9  ;;  %v566_v7 = vrot.slane %v527_v36, 7  ;;  %v614_v42 = vrot.slane %v527_v36, 1 }
 0x17e   :  { %v567_v5 = vsel %vm59_vm0, %v565_v37, %v566_v7  ;;  %v615_v45 = vsel %vm108_vm1, %v613_v1, %v614_v42  ;;  %v480_v47 = vadd.f32 %v1679_v44, %v460_v0 }
 0x17f   :  { %v1277_v50 = vpack.c.bf16 %v567_v5, %v565_v37  ;;  %v1301_v51 = vpack.c.bf16 %v614_v42, %v615_v45 }
 0x180   :  { %v496_v41 = vmul.f32 0.01, %v480_v47 }
 0x181   :  { %v418_v52 = vpop.f32.mrf.mxu0 }
 0x182   :  { %v419_v53 = vadd.f32 %v418_v52, %v1669_v25  ;;  %v512_v61 = vmax.f32 %v480_v47, %v496_v41 }
 0x184   :  { %v461_v57 = vmul.f32 %v1674_v24, %v419_v53  ;;  %v592_v4 = vrot.slane %v512_v61, 1  ;;  %v544_v26 = vrot.slane %v512_v61, 7 }
 0x186   :  { %v481_v59 = vadd.f32 %v1679_v44, %v461_v57 }
 0x188   :  { %v497_v62 = vmul.f32 0.01, %v481_v59 }
 0x18a   :  { %v513_v3 = vmax.f32 %v481_v59, %v497_v62 }
 0x18c   :  { %v545_v6 = vrot.slane %v513_v3, 7  ;;  %v641_v17 = vpack.c.bf16 %v513_v3, %v512_v61  ;;  %v593_v27 = vrot.slane %v513_v3, 1 }
 0x18e   :  { %913 = vmatmul.bf16.vlgmr.msrb.gmra.mxu3 %v641_v17  ;;  %v546_v25 = vsel %vm59_vm0, %v544_v26, %v545_v6  ;;  %v594_v24 = vsel %vm108_vm1, %v592_v4, %v593_v27 }
 0x18f   :  { %v1249_v29 = vpack.c.bf16 %v546_v25, %v544_v26  ;;  %v1280_v9 = vpack.c.bf16 %v593_v27, %v594_v24 }
 0x191   :  { %1250 = vmatmul.msk.bf16.vlgmr.msrb.gmra.mxu2 %vm1886_vm5, %v1249_v29  ;;  %1281 = vmatmul.msk.bf16.vlgmr.msrb.gmra.mxu1 %vm1893_vm6, %v1280_v9 }
 0x19e   :  { %918 = vmatmul.bf16.gmra.mxu3 %v644_v60 }
 0x1a1   :  { %1254 = vmatmul.msk.bf16.gmra.mxu2 %vm1886_vm5, %v1699_v8  ;;  %1284 = vmatmul.msk.bf16.gmra.mxu1 %vm1893_vm6, %v1701_v11  ;;  %v1962_v11 = vld [vmem:[%s2054_s5] ss:$0 sm:$0xff] }
 0x1ae   :  { %923 = vmatmul.bf16.gmra.mxu3 %v647_v30  ;;  %v1967_v30 = vld [vmem:[%s2055_s6] ss:$0 sm:$0xff] }
 0x1b1   :  { %1258 = vmatmul.msk.bf16.gmra.mxu2 %vm1886_vm5, %v1719_v34  ;;  %1287 = vmatmul.msk.bf16.gmra.mxu1 %vm1893_vm6, %v1721_v35 }
 0x1be   :  { %928 = vmatmul.bf16.gmra.mxu3 %v650_v49 }
 0x1c1   :  { %1262 = vmatmul.msk.bf16.gmra.mxu2 %vm1886_vm5, %v1739_v55  ;;  %1290 = vmatmul.msk.bf16.gmra.mxu1 %vm1893_vm6, %v1741_v13 }
 0x1ce   :  { %933 = vmatmul.bf16.gmra.mxu3 %v653_v23 }
 0x1d1   :  { %1266 = vmatmul.msk.bf16.gmra.mxu2 %vm1886_vm5, %v1768_v22  ;;  %1293 = vmatmul.msk.bf16.gmra.mxu1 %vm1893_vm6, %v1770_v33 }
 0x1de   :  { %938 = vmatmul.bf16.gmra.mxu3 %v656_v63 }
 0x1e1   :  { %1270 = vmatmul.msk.bf16.gmra.mxu2 %vm1886_vm5, %v1818_v19  ;;  %1296 = vmatmul.msk.bf16.gmra.mxu1 %vm1893_vm6, %v1820_v16 }
 0x1ee   :  { %943 = vmatmul.bf16.gmra.mxu3 %v659_v58 }
 0x1f1   :  { %1274 = vmatmul.msk.bf16.gmra.mxu2 %vm1886_vm5, %v1871_v12  ;;  %1299 = vmatmul.msk.bf16.gmra.mxu1 %vm1893_vm6, %v1873_v15 }
 0x1fe   :  { %948 = vmatmul.bf16.gmra.mxu3 %v662_v39 }
 0x201   :  { %1278 = vmatmul.msk.bf16.gmra.mxu2 %vm1886_vm5, %v1277_v50  ;;  %1302 = vmatmul.msk.bf16.gmra.mxu1 %vm1893_vm6, %v1301_v51 }
 0x20e   :  { %v963_v54 = vpop.f32.mrf.mxu1 }
 0x211   :  { %v914_v56 = vpop.f32.mrf.mxu3 }
 0x214   :  { %v865_v60 = vpop.f32.mrf.mxu2 }
 0x215   :  { %v915_v8 = vadd.f32 %v914_v56, %v865_v60 }
 0x216   :  { %v965_v20 = vpop.f32.mrf.mxu1 }
 0x217   :  { %v964_v28 = vadd.f32 %v963_v54, %v915_v8 }
 0x219   :  { %v1007_v34 = vmul.f32 %v1962_v11, %v964_v28  ;;  %v916_v35 = vpop.f32.mrf.mxu3 }
 0x21b   :  { %v1027_v40 = vadd.f32 %v1967_v30, %v1007_v34 }
 0x21c   :  { %v867_v43 = vpop.f32.mrf.mxu2 }
 0x21d   :  { %v1043_v49 = vmul.f32 0.01, %v1027_v40  ;;  %v917_v55 = vadd.f32 %v916_v35, %v867_v43 }
 0x21e   :  { %v968_v13 = vpop.f32.mrf.mxu1 }
 0x21f   :  { %v1059_v2 = vmax.f32 %v1027_v40, %v1043_v49  ;;  %v966_v18 = vadd.f32 %v965_v20, %v917_v55 }
 0x221   :  { %1075 = vst [vmem:[%s2056_s7] sm:$0xff] %v1059_v2  ;;  %v1008_v23 = vmul.f32 %v1962_v11, %v966_v18  ;;  %v919_v22 = vpop.f32.mrf.mxu3 }
 0x223   :  { %v1028_v33 = vadd.f32 %v1967_v30, %v1008_v23 }
 0x224   :  { %v870_v46 = vpop.f32.mrf.mxu2 }
 0x225   :  { %v1044_v14 = vmul.f32 0.01, %v1028_v33  ;;  %v920_v63 = vadd.f32 %v919_v22, %v870_v46 }
 0x226   :  { %v970_v19 = vpop.f32.mrf.mxu1 }
 0x227   :  { %v1060_v16 = vmax.f32 %v1028_v33, %v1044_v14  ;;  %v969_v38 = vadd.f32 %v968_v13, %v920_v63 }
 0x229   :  { %1076 = vst [vmem:[%s2056_s7 + $0x8] sm:$0xff] %v1060_v16  ;;  %v1009_v48 = vmul.f32 %v1962_v11, %v969_v38  ;;  %v921_v58 = vpop.f32.mrf.mxu3 }
 0x22b   :  { %v1029_v12 = vadd.f32 %v1967_v30, %v1009_v48 }
 0x22c   :  { %v872_v15 = vpop.f32.mrf.mxu2 }
 0x22d   :  { %v1045_v31 = vmul.f32 0.01, %v1029_v12  ;;  %v922_v32 = vadd.f32 %v921_v58, %v872_v15 }
 0x22e   :  { %v973_v21 = vpop.f32.mrf.mxu1 }
 0x22f   :  { %v1061_v36 = vmax.f32 %v1029_v12, %v1045_v31  ;;  %v971_v37 = vadd.f32 %v970_v19, %v922_v32 }
 0x231   :  { %1077 = vst [vmem:[%s2056_s7 + $0x10] sm:$0xff] %v1061_v36  ;;  %v1010_v1 = vmul.f32 %v1962_v11, %v971_v37  ;;  %v924_v0 = vpop.f32.mrf.mxu3 }
 0x233   :  { %v1030_v39 = vadd.f32 %v1967_v30, %v1010_v1 }
 0x234   :  { %v875_v7 = vpop.f32.mrf.mxu2 }
 0x235   :  { %v1046_v42 = vmul.f32 0.01, %v1030_v39  ;;  %v925_v5 = vadd.f32 %v924_v0, %v875_v7 }
 0x236   :  { %v975_v45 = vpop.f32.mrf.mxu1 }
 0x237   :  { %v1062_v47 = vmax.f32 %v1030_v39, %v1046_v42  ;;  %v974_v50 = vadd.f32 %v973_v21, %v925_v5 }
 0x239   :  { %1078 = vst [vmem:[%s2056_s7 + $0x18] sm:$0xff] %v1062_v47  ;;  %v1011_v51 = vmul.f32 %v1962_v11, %v974_v50  ;;  %v926_v52 = vpop.f32.mrf.mxu3 }
 0x23b   :  { %v1031_v53 = vadd.f32 %v1967_v30, %v1011_v51 }
 0x23c   :  { %v877_v41 = vpop.f32.mrf.mxu2 }
 0x23d   :  { %v1047_v57 = vmul.f32 0.01, %v1031_v53  ;;  %v927_v59 = vadd.f32 %v926_v52, %v877_v41 }
 0x23e   :  { %v978_v61 = vpop.f32.mrf.mxu1 }
 0x23f   :  { %v1063_v62 = vmax.f32 %v1031_v53, %v1047_v57  ;;  %v976_v3 = vadd.f32 %v975_v45, %v927_v59 }
 0x241   :  { %1079 = vst [vmem:[%s2056_s7 + $0x20] sm:$0xff] %v1063_v62  ;;  %v1012_v4 = vmul.f32 %v1962_v11, %v976_v3  ;;  %v929_v6 = vpop.f32.mrf.mxu3 }
 0x243   :  { %v1032_v17 = vadd.f32 %v1967_v30, %v1012_v4 }
 0x244   :  { %v880_v26 = vpop.f32.mrf.mxu2 }
 0x245   :  { %v1048_v27 = vmul.f32 0.01, %v1032_v17  ;;  %v930_v10 = vadd.f32 %v929_v6, %v880_v26 }
 0x246   :  { %v980_v25 = vpop.f32.mrf.mxu1 }
 0x247   :  { %v1064_v24 = vmax.f32 %v1032_v17, %v1048_v27  ;;  %v979_v44 = vadd.f32 %v978_v61, %v930_v10 }
 0x249   :  { %1080 = vst [vmem:[%s2056_s7 + $0x28] sm:$0xff] %v1064_v24  ;;  %v1013_v29 = vmul.f32 %v1962_v11, %v979_v44  ;;  %v931_v9 = vpop.f32.mrf.mxu3 }
 0x24b   :  { %v1033_v54 = vadd.f32 %v1967_v30, %v1013_v29 }
 0x24c   :  { %v882_v56 = vpop.f32.mrf.mxu2 }
 0x24d   :  { %v1049_v60 = vmul.f32 0.01, %v1033_v54  ;;  %v932_v8 = vadd.f32 %v931_v9, %v882_v56 }
 0x24e   :  { %v983_v20 = vpop.f32.mrf.mxu1 }
 0x24f   :  { %v1065_v28 = vmax.f32 %v1033_v54, %v1049_v60  ;;  %v981_v34 = vadd.f32 %v980_v25, %v932_v8 }
 0x251   :  { %1081 = vst [vmem:[%s2056_s7 + $0x30] sm:$0xff] %v1065_v28  ;;  %v1014_v35 = vmul.f32 %v1962_v11, %v981_v34  ;;  %v934_v40 = vpop.f32.mrf.mxu3 }
 0x253   :  { %v1034_v43 = vadd.f32 %v1967_v30, %v1014_v35 }
 0x254   :  { %v885_v49 = vpop.f32.mrf.mxu2 }
 0x255   :  { %v1050_v55 = vmul.f32 0.01, %v1034_v43  ;;  %v935_v13 = vadd.f32 %v934_v40, %v885_v49 }
 0x256   :  { %v985_v2 = vpop.f32.mrf.mxu1 }
 0x257   :  { %v1066_v18 = vmax.f32 %v1034_v43, %v1050_v55  ;;  %v984_v23 = vadd.f32 %v983_v20, %v935_v13 }
 0x259   :  { %1082 = vst [vmem:[%s2056_s7 + $0x38] sm:$0xff] %v1066_v18  ;;  %v1015_v22 = vmul.f32 %v1962_v11, %v984_v23  ;;  %v936_v33 = vpop.f32.mrf.mxu3 }
 0x25b   :  { %v1035_v46 = vadd.f32 %v1967_v30, %v1015_v22 }
 0x25c   :  { %v887_v14 = vpop.f32.mrf.mxu2 }
 0x25d   :  { %v1051_v63 = vmul.f32 0.01, %v1035_v46  ;;  %v937_v19 = vadd.f32 %v936_v33, %v887_v14 }
 0x25e   :  { %v988_v16 = vpop.f32.mrf.mxu1 }
 0x25f   :  { %v1067_v38 = vmax.f32 %v1035_v46, %v1051_v63  ;;  %v986_v48 = vadd.f32 %v985_v2, %v937_v19 }
 0x261   :  { %1083 = vst [vmem:[%s2056_s7 + $0x40] sm:$0xff] %v1067_v38  ;;  %v1016_v58 = vmul.f32 %v1962_v11, %v986_v48  ;;  %v939_v12 = vpop.f32.mrf.mxu3 }
 0x263   :  { %v1036_v15 = vadd.f32 %v1967_v30, %v1016_v58 }
 0x264   :  { %v890_v31 = vpop.f32.mrf.mxu2 }
 0x265   :  { %v1052_v32 = vmul.f32 0.01, %v1036_v15  ;;  %v940_v21 = vadd.f32 %v939_v12, %v890_v31 }
 0x266   :  { %v990_v36 = vpop.f32.mrf.mxu1 }
 0x267   :  { %v1068_v37 = vmax.f32 %v1036_v15, %v1052_v32  ;;  %v989_v1 = vadd.f32 %v988_v16, %v940_v21 }
 0x269   :  { %1084 = vst [vmem:[%s2056_s7 + $0x48] sm:$0xff] %v1068_v37  ;;  %v1017_v0 = vmul.f32 %v1962_v11, %v989_v1  ;;  %v941_v39 = vpop.f32.mrf.mxu3 }
 0x26b   :  { %v1037_v7 = vadd.f32 %v1967_v30, %v1017_v0 }
 0x26c   :  { %v892_v42 = vpop.f32.mrf.mxu2 }
 0x26d   :  { %v1053_v5 = vmul.f32 0.01, %v1037_v7  ;;  %v942_v45 = vadd.f32 %v941_v39, %v892_v42 }
 0x26e   :  { %v993_v51 = vpop.f32.mrf.mxu1 }
 0x26f   :  { %v1069_v47 = vmax.f32 %v1037_v7, %v1053_v5  ;;  %v991_v50 = vadd.f32 %v990_v36, %v942_v45 }
 0x271   :  { %1085 = vst [vmem:[%s2056_s7 + $0x50] sm:$0xff] %v1069_v47  ;;  %v1018_v52 = vmul.f32 %v1962_v11, %v991_v50  ;;  %v944_v53 = vpop.f32.mrf.mxu3 }
 0x273   :  { %v1038_v41 = vadd.f32 %v1967_v30, %v1018_v52 }
 0x274   :  { %v895_v57 = vpop.f32.mrf.mxu2 }
 0x275   :  { %v1054_v59 = vmul.f32 0.01, %v1038_v41  ;;  %v945_v61 = vadd.f32 %v944_v53, %v895_v57 }
 0x276   :  { %v995_v17 = vpop.f32.mrf.mxu1 }
 0x277   :  { %v1070_v62 = vmax.f32 %v1038_v41, %v1054_v59  ;;  %v994_v3 = vadd.f32 %v993_v51, %v945_v61 }
 0x279   :  { %1086 = vst [vmem:[%s2056_s7 + $0x58] sm:$0xff] %v1070_v62  ;;  %v1019_v4 = vmul.f32 %v1962_v11, %v994_v3  ;;  %v946_v6 = vpop.f32.mrf.mxu3 }
 0x27b   :  { %v1039_v26 = vadd.f32 %v1967_v30, %v1019_v4 }
 0x27c   :  { %v897_v27 = vpop.f32.mrf.mxu2 }
 0x27d   :  { %v1055_v10 = vmul.f32 0.01, %v1039_v26  ;;  %v947_v25 = vadd.f32 %v946_v6, %v897_v27 }
 0x27e   :  { %v998_v56 = vpop.f32.mrf.mxu1 }
 0x27f   :  { %v1071_v24 = vmax.f32 %v1039_v26, %v1055_v10  ;;  %v996_v44 = vadd.f32 %v995_v17, %v947_v25 }
 0x281   :  { %1087 = vst [vmem:[%s2056_s7 + $0x60] sm:$0xff] %v1071_v24  ;;  %v1020_v29 = vmul.f32 %v1962_v11, %v996_v44  ;;  %v949_v9 = vpop.f32.mrf.mxu3 }
 0x283   :  { %v1040_v54 = vadd.f32 %v1967_v30, %v1020_v29 }
 0x284   :  { %v900_v60 = vpop.f32.mrf.mxu2 }
 0x285   :  { %v1056_v8 = vmul.f32 0.01, %v1040_v54  ;;  %v950_v20 = vadd.f32 %v949_v9, %v900_v60 }
 0x286   :  { %v1000_v2 = vpop.f32.mrf.mxu1 }
 0x287   :  { %v1072_v28 = vmax.f32 %v1040_v54, %v1056_v8  ;;  %v999_v34 = vadd.f32 %v998_v56, %v950_v20 }
 0x289   :  { %1088 = vst [vmem:[%s2056_s7 + $0x68] sm:$0xff] %v1072_v28  ;;  %v1021_v35 = vmul.f32 %v1962_v11, %v999_v34  ;;  %v951_v43 = vpop.f32.mrf.mxu3 }
 0x28b   :  { %v1041_v40 = vadd.f32 %v1967_v30, %v1021_v35 }
 0x28c   :  { %v902_v49 = vpop.f32.mrf.mxu2 }
 0x28d   :  { %v1057_v55 = vmul.f32 0.01, %v1041_v40  ;;  %v952_v13 = vadd.f32 %v951_v43, %v902_v49 }
 0x28f   :  { %v1073_v18 = vmax.f32 %v1041_v40, %v1057_v55  ;;  %v1001_v23 = vadd.f32 %v1000_v2, %v952_v13 }
 0x291   :  { %1089 = vst [vmem:[%s2056_s7 + $0x70] sm:$0xff] %v1073_v18  ;;  %v1022_v22 = vmul.f32 %v1962_v11, %v1001_v23 }
 0x293   :  { %v1042_v33 = vadd.f32 %v1967_v30, %v1022_v22 }
 0x295   :  { %v1058_v46 = vmul.f32 0.01, %v1042_v33 }
 0x297   :  { %v1074_v14 = vmax.f32 %v1042_v33, %v1058_v46 }
 0x299   :  { %1090 = vst [vmem:[%s2056_s7 + $0x78] sm:$0xff] %v1074_v14 }

</bundles_post_ra>
